<compile_context>
chip_gen: v7x
topology: tpu7x:2x2x1
jax: 0.10.0
libtpu: 0.0.40
codegen_flags: <defaults>
</compile_context>

<pallas_src>
import functools

import jax
import jax.numpy as jnp
from jax.experimental import pallas as pl
from jax.experimental.pallas import tpu as pltpu


def _round_up(x, m):
    return ((x + m - 1) // m) * m


def _qfunction_kernel(obs_ref, act_ref, w1o_ref, w1a_ref, b1_ref,
                      w2_ref, b2_ref, w3_ref, b3_ref, o_ref):
    # Layer 1: concat-free  relu(obs @ W1o + act @ W1a + b1)
    h1 = jnp.dot(obs_ref[...], w1o_ref[...], preferred_element_type=jnp.float32)
    h1 = h1 + jnp.dot(act_ref[...], w1a_ref[...],
                      preferred_element_type=jnp.float32)
    h1 = jnp.maximum(h1 + b1_ref[...], 0.0)

    # Layer 2: relu(h1 @ W2 + b2)
    h2 = jnp.dot(h1.astype(w2_ref.dtype), w2_ref[...],
                 preferred_element_type=jnp.float32)
    h2 = jnp.maximum(h2 + b2_ref[...], 0.0)

    # Layer 3: h2 @ W3 + b3  -> (TB, 1)
    q = jnp.dot(h2.astype(w3_ref.dtype), w3_ref[...],
                preferred_element_type=jnp.float32)
    o_ref[...] = (q + b3_ref[...]).astype(o_ref.dtype)


def qfunction_forward(obs, action, params, *, block_b=256):
    """obs: (B, obs_dim), action: (B, action_dim).

    params = (w1, b1, w2, b2, w3, b3) in PyTorch nn.Linear layout:
      w1: (hidden, obs_dim + action_dim), b1: (hidden,)
      w2: (hidden, hidden),               b2: (hidden,)
      w3: (1, hidden),                    b3: (1,)
    """
    B, obs_dim = obs.shape
    _, act_dim = action.shape
    w1, b1, w2, b2, w3, b3 = params
    hidden = w1.shape[0]

    # Split W1 into obs / action column blocks and transpose to (in, out)
    # layout so the kernel never materializes cat([obs, action]) in HBM.
    w1o = jnp.asarray(w1[:, :obs_dim].T, jnp.float32)        # (obs_dim, hidden)
    w1a = jnp.asarray(w1[:, obs_dim:].T, jnp.float32)        # (act_dim, hidden)
    w2t = jnp.asarray(w2.T, jnp.float32)                     # (hidden, hidden)
    w3t = jnp.asarray(w3.T, jnp.float32)                     # (hidden, 1)
    b1r = jnp.asarray(b1, jnp.float32).reshape(1, hidden)
    b2r = jnp.asarray(b2, jnp.float32).reshape(1, hidden)
    b3r = jnp.asarray(b3, jnp.float32).reshape(1, 1)

    # Batch tiling: large tiles amortize the per-grid-step overhead; pad the
    # batch so the tile (second-to-last dim of the block) is a multiple of 8.
    TB = min(block_b, _round_up(B, 8))
    B_pad = _round_up(B, TB)
    if B_pad != B:
        obs = jnp.pad(obs, ((0, B_pad - B), (0, 0)))
        action = jnp.pad(action, ((0, B_pad - B), (0, 0)))
    n_b = B_pad // TB

    out = pl.pallas_call(
        _qfunction_kernel,
        out_shape=jax.ShapeDtypeStruct((B_pad, 1), jnp.float32),
        grid_spec=pltpu.PrefetchScalarGridSpec(
            num_scalar_prefetch=0,
            grid=(n_b,),
            in_specs=[
                # batch-tiled activations
                pl.BlockSpec((TB, obs_dim), lambda i: (i, 0)),
                pl.BlockSpec((TB, act_dim), lambda i: (i, 0)),
                # weights / biases: full arrays, resident across grid steps
                pl.BlockSpec((obs_dim, hidden), lambda i: (0, 0)),
                pl.BlockSpec((act_dim, hidden), lambda i: (0, 0)),
                pl.BlockSpec((1, hidden), lambda i: (0, 0)),
                pl.BlockSpec((hidden, hidden), lambda i: (0, 0)),
                pl.BlockSpec((1, hidden), lambda i: (0, 0)),
                pl.BlockSpec((hidden, 1), lambda i: (0, 0)),
                pl.BlockSpec((1, 1), lambda i: (0, 0)),
            ],
            out_specs=pl.BlockSpec((TB, 1), lambda i: (i, 0)),
        ),
        compiler_params=pltpu.CompilerParams(
            dimension_semantics=("parallel",)),
    )(obs, action, w1o, w1a, b1r, w2t, b2r, w3t, b3r)

    return out[:B]


def qfunction_reference(obs, action, params):
    w1, b1, w2, b2, w3, b3 = params
    x = jnp.concatenate([obs, action], axis=1)
    h = jax.nn.relu(x @ w1.T + b1)
    h = jax.nn.relu(h @ w2.T + b2)
    return h @ w3.T + b3


if __name__ == "__main__":
    key = jax.random.PRNGKey(0)
    keys = jax.random.split(key, 8)

    B, obs_dim, act_dim, hidden = 2, 24, 8, 32
    in_dim = obs_dim + act_dim

    obs = jax.random.normal(keys[0], (B, obs_dim), dtype=jnp.float32)
    action = jax.random.normal(keys[1], (B, act_dim), dtype=jnp.float32)

    # PyTorch nn.Linear-layout parameters (out_features, in_features).
    w1 = 0.1 * jax.random.normal(keys[2], (hidden, in_dim), dtype=jnp.float32)
    b1 = 0.1 * jax.random.normal(keys[3], (hidden,), dtype=jnp.float32)
    w2 = 0.1 * jax.random.normal(keys[4], (hidden, hidden), dtype=jnp.float32)
    b2 = 0.1 * jax.random.normal(keys[5], (hidden,), dtype=jnp.float32)
    w3 = 0.1 * jax.random.normal(keys[6], (1, hidden), dtype=jnp.float32)
    b3 = 0.1 * jax.random.normal(keys[7], (1,), dtype=jnp.float32)
    params = (w1, b1, w2, b2, w3, b3)

    q = qfunction_forward(obs, action, params)
    q = jax.block_until_ready(q)

    q_ref = qfunction_reference(obs, action, params)
    assert q.shape == (B, 1)
    assert jnp.allclose(q, q_ref, atol=1e-5, rtol=1e-5), (q, q_ref)

    print("KERNEL_OK")
</pallas_src>

<mosaic_0001>
module attributes {stable_mosaic.version = 11 : i64} {
  func.func @_qfunction_kernel(%arg0: i32, %arg1: memref<8x24xf32, #tpu.memory_space<vmem>>, %arg2: memref<8x8xf32, #tpu.memory_space<vmem>>, %arg3: memref<24x32xf32, #tpu.memory_space<vmem>>, %arg4: memref<8x32xf32, #tpu.memory_space<vmem>>, %arg5: memref<1x32xf32, #tpu.memory_space<vmem>>, %arg6: memref<32x32xf32, #tpu.memory_space<vmem>>, %arg7: memref<1x32xf32, #tpu.memory_space<vmem>>, %arg8: memref<32x1xf32, #tpu.memory_space<vmem>>, %arg9: memref<1x1xf32, #tpu.memory_space<vmem>>, %arg10: memref<8x1xf32, #tpu.memory_space<vmem>>) attributes {dimension_semantics = [#tpu.dimension_semantics<parallel>], iteration_bounds = array<i64: 1>, scalar_prefetch = 0 : i64, scratch_operands = 0 : i64, tpu.core_type = #tpu.core_type<tc>, window_params = [{transform_indices = @transform_0, window_bounds = array<i64: 8, 24>}, {transform_indices = @transform_1, window_bounds = array<i64: 8, 8>}, {pipeline_mode = #tpu.pipeline_mode<synchronous>, transform_indices = @transform_2, window_bounds = array<i64: 24, 32>}, {pipeline_mode = #tpu.pipeline_mode<synchronous>, transform_indices = @transform_3, window_bounds = array<i64: 8, 32>}, {pipeline_mode = #tpu.pipeline_mode<synchronous>, transform_indices = @transform_4, window_bounds = array<i64: 1, 32>}, {pipeline_mode = #tpu.pipeline_mode<synchronous>, transform_indices = @transform_5, window_bounds = array<i64: 32, 32>}, {pipeline_mode = #tpu.pipeline_mode<synchronous>, transform_indices = @transform_6, window_bounds = array<i64: 1, 32>}, {pipeline_mode = #tpu.pipeline_mode<synchronous>, transform_indices = @transform_7, window_bounds = array<i64: 32, 1>}, {pipeline_mode = #tpu.pipeline_mode<synchronous>, transform_indices = @transform_8, window_bounds = array<i64: 1, 1>}, {transform_indices = @transform_9, window_bounds = array<i64: 8, 1>}]} {
    %c0 = arith.constant 0 : index
    %c0_0 = arith.constant 0 : index
    %0 = vector.load %arg1[%c0, %c0_0] : memref<8x24xf32, #tpu.memory_space<vmem>>, vector<8x24xf32>
    %c0_1 = arith.constant 0 : index
    %c0_2 = arith.constant 0 : index
    %1 = vector.load %arg3[%c0_1, %c0_2] : memref<24x32xf32, #tpu.memory_space<vmem>>, vector<24x32xf32>
    %cst = arith.constant dense<0.000000e+00> : vector<8x32xf32>
    %2 = tpu.matmul %0, %1, %cst {dimension_numbers = #tpu.dot_dimension_numbers<[1], [0], [0], [1], [0, 0, 1, 1], [], []>} : vector<8x24xf32>, vector<24x32xf32>, vector<8x32xf32> -> vector<8x32xf32>
    %c0_3 = arith.constant 0 : index
    %c0_4 = arith.constant 0 : index
    %3 = vector.load %arg2[%c0_3, %c0_4] : memref<8x8xf32, #tpu.memory_space<vmem>>, vector<8x8xf32>
    %c0_5 = arith.constant 0 : index
    %c0_6 = arith.constant 0 : index
    %4 = vector.load %arg4[%c0_5, %c0_6] : memref<8x32xf32, #tpu.memory_space<vmem>>, vector<8x32xf32>
    %cst_7 = arith.constant dense<0.000000e+00> : vector<8x32xf32>
    %5 = tpu.matmul %3, %4, %cst_7 {dimension_numbers = #tpu.dot_dimension_numbers<[1], [0], [0], [1], [0, 0, 1, 1], [], []>} : vector<8x8xf32>, vector<8x32xf32>, vector<8x32xf32> -> vector<8x32xf32>
    %6 = arith.addf %2, %5 : vector<8x32xf32>
    %c0_8 = arith.constant 0 : index
    %c0_9 = arith.constant 0 : index
    %7 = vector.load %arg5[%c0_8, %c0_9] : memref<1x32xf32, #tpu.memory_space<vmem>>, vector<1x32xf32>
    %8 = vector.broadcast %7 : vector<1x32xf32> to vector<8x32xf32>
    %9 = arith.addf %6, %8 : vector<8x32xf32>
    %cst_10 = arith.constant 0.000000e+00 : f32
    %10 = vector.broadcast %cst_10 : f32 to vector<8x32xf32>
    %11 = arith.maximumf %9, %10 : vector<8x32xf32>
    %c0_11 = arith.constant 0 : index
    %c0_12 = arith.constant 0 : index
    %12 = vector.load %arg6[%c0_11, %c0_12] : memref<32x32xf32, #tpu.memory_space<vmem>>, vector<32x32xf32>
    %cst_13 = arith.constant dense<0.000000e+00> : vector<8x32xf32>
    %13 = tpu.matmul %11, %12, %cst_13 {dimension_numbers = #tpu.dot_dimension_numbers<[1], [0], [0], [1], [0, 0, 1, 1], [], []>} : vector<8x32xf32>, vector<32x32xf32>, vector<8x32xf32> -> vector<8x32xf32>
    %c0_14 = arith.constant 0 : index
    %c0_15 = arith.constant 0 : index
    %14 = vector.load %arg7[%c0_14, %c0_15] : memref<1x32xf32, #tpu.memory_space<vmem>>, vector<1x32xf32>
    %15 = vector.broadcast %14 : vector<1x32xf32> to vector<8x32xf32>
    %16 = arith.addf %13, %15 : vector<8x32xf32>
    %cst_16 = arith.constant 0.000000e+00 : f32
    %17 = vector.broadcast %cst_16 : f32 to vector<8x32xf32>
    %18 = arith.maximumf %16, %17 : vector<8x32xf32>
    %c0_17 = arith.constant 0 : index
    %c0_18 = arith.constant 0 : index
    %19 = vector.load %arg8[%c0_17, %c0_18] : memref<32x1xf32, #tpu.memory_space<vmem>>, vector<32x1xf32>
    %cst_19 = arith.constant dense<0.000000e+00> : vector<8x1xf32>
    %20 = tpu.matmul %18, %19, %cst_19 {dimension_numbers = #tpu.dot_dimension_numbers<[1], [0], [0], [1], [0, 0, 1, 1], [], []>} : vector<8x32xf32>, vector<32x1xf32>, vector<8x1xf32> -> vector<8x1xf32>
    %c0_20 = arith.constant 0 : index
    %c0_21 = arith.constant 0 : index
    %21 = vector.load %arg9[%c0_20, %c0_21] : memref<1x1xf32, #tpu.memory_space<vmem>>, vector<1x1xf32>
    %22 = vector.broadcast %21 : vector<1x1xf32> to vector<8x1xf32>
    %23 = arith.addf %20, %22 : vector<8x1xf32>
    %c0_22 = arith.constant 0 : index
    %c0_23 = arith.constant 0 : index
    %24 = vector.load %arg10[%c0_22, %c0_23] : memref<8x1xf32, #tpu.memory_space<vmem>>, vector<8x1xf32>
    tpu.vector_store %arg10[%c0_22, %c0_23], %23 {strides = array<i32>} : memref<8x1xf32, #tpu.memory_space<vmem>>, vector<8x1xf32>,
    return
  }
  func.func @transform_0(%arg0: i32) -> (i32, i32) {
    %c0_i32 = arith.constant 0 : i32
    %c0_i32_0 = arith.constant 0 : i32
    return %arg0, %c0_i32 : i32, i32
  }
  func.func @transform_1(%arg0: i32) -> (i32, i32) {
    %c0_i32 = arith.constant 0 : i32
    %c0_i32_0 = arith.constant 0 : i32
    return %arg0, %c0_i32 : i32, i32
  }
  func.func @transform_2(%arg0: i32) -> (i32, i32) {
    %c0_i32 = arith.constant 0 : i32
    %c0_i32_0 = arith.constant 0 : i32
    %c0_i32_1 = arith.constant 0 : i32
    return %c0_i32, %c0_i32_0 : i32, i32
  }
  func.func @transform_3(%arg0: i32) -> (i32, i32) {
    %c0_i32 = arith.constant 0 : i32
    %c0_i32_0 = arith.constant 0 : i32
    %c0_i32_1 = arith.constant 0 : i32
    return %c0_i32, %c0_i32_0 : i32, i32
  }
  func.func @transform_4(%arg0: i32) -> (i32, i32) {
    %c0_i32 = arith.constant 0 : i32
    %c0_i32_0 = arith.constant 0 : i32
    %c0_i32_1 = arith.constant 0 : i32
    return %c0_i32, %c0_i32_0 : i32, i32
  }
  func.func @transform_5(%arg0: i32) -> (i32, i32) {
    %c0_i32 = arith.constant 0 : i32
    %c0_i32_0 = arith.constant 0 : i32
    %c0_i32_1 = arith.constant 0 : i32
    return %c0_i32, %c0_i32_0 : i32, i32
  }
  func.func @transform_6(%arg0: i32) -> (i32, i32) {
    %c0_i32 = arith.constant 0 : i32
    %c0_i32_0 = arith.constant 0 : i32
    %c0_i32_1 = arith.constant 0 : i32
    return %c0_i32, %c0_i32_0 : i32, i32
  }
  func.func @transform_7(%arg0: i32) -> (i32, i32) {
    %c0_i32 = arith.constant 0 : i32
    %c0_i32_0 = arith.constant 0 : i32
    %c0_i32_1 = arith.constant 0 : i32
    return %c0_i32, %c0_i32_0 : i32, i32
  }
  func.func @transform_8(%arg0: i32) -> (i32, i32) {
    %c0_i32 = arith.constant 0 : i32
    %c0_i32_0 = arith.constant 0 : i32
    %c0_i32_1 = arith.constant 0 : i32
    return %c0_i32, %c0_i32_0 : i32, i32
  }
  func.func @transform_9(%arg0: i32) -> (i32, i32) {
    %c0_i32 = arith.constant 0 : i32
    %c0_i32_0 = arith.constant 0 : i32
    return %arg0, %c0_i32 : i32, i32
  }
}

</mosaic_0001>

<bundles_post_ra>
// kernel: tpu_custom_call.1
= control target key start
LH: loop header
LB: loop body
LE: loop exit
PB: predicated region body
PF: predicated region fallthrough
CT: control target
= control target key end

     0   :  { %s657_s0 = inlined_call_operand.vmem [shape: f32[8,24], index: 0, kind: input, shape index: {}]   ;;  %s658_s1 = inlined_call_operand.vmem [shape: f32[8,8], index: 1, kind: input, shape index: {}]   ;;  %s659_s2 = inlined_call_operand.hbm [shape: f32[24,32], index: 2, kind: input, shape index: {}]   ;;  %s660_s3 = inlined_call_operand.hbm [shape: f32[8,32], index: 3, kind: input, shape index: {}]   ;;  %s661_s4 = inlined_call_operand.vmem [shape: f32[1,32], index: 4, kind: input, shape index: {}]   ;;  %s662_s5 = inlined_call_operand.vmem [shape: f32[32,32], index: 5, kind: input, shape index: {}]   ;;  %s663_s6 = inlined_call_operand.vmem [shape: f32[1,32], index: 6, kind: input, shape index: {}]   ;;  %s664_s7 = inlined_call_operand.vmem [shape: f32[32,1], index: 7, kind: input, shape index: {}]   ;;  %s665_s8 = inlined_call_operand.<no memory space> [shape: f32[1,1], index: 8, kind: input, shape index: {}]   ;;  %s666_s9 = inlined_call_operand.vmem [shape: f32[8,1], index: 9, kind: output, shape index: {}]  }
   0x1   :  { %v14_v0 = vstv %s665_s8 }
   0x2   :  { %15 = vst [vmem:[#allocation2] sm:$0x1] %v14_v0 }
   0x3   :  { %16 = vsyncpa [#allocation4], 0 }
   0x4   :  { %17 = vsyncpa [#allocation6], 0  ;;  %s530_s11 = smov [#allocation3]   ;;  %s482_s15 = scalar_lea.hbm %s659_s2, 384 }
   0x5   :  { %s27_s12 = sshll.u32 %s530_s11, 4  ;;  %p483_p0 = scmp.ne.s32.totalorder %s659_s2, %s482_s15  ;;  %s28_s12 = int_to_ptr.vmem [resolvable:$true] %s27_s12 }
   0x6   :  { %p486_p1 = scmp.lt.u32.totalorder %s482_s15, %s659_s2 }
   0x8   :  { %p488_p2 = pnand %p486_p1, %p483_p0 }
   0xa   :  { %491 = shalt.err (!%p488_p2)
}
   0xb   :  { %s492_s8 = scalar_lea.vmem %s28_s12, 384  ;;  %p497_p4 = scmp.lt.s32.totalorder %s28_s12, %s28_s12 }
   0xc   :  { %p493_p3 = scmp.ne.s32.totalorder %s28_s12, %s492_s8  ;;  %p498_p5 = scmp.lt.s32.totalorder %s492_s8, %s492_s8 }
   0xe   :  { %p499_p6 = por %p498_p5, %p497_p4 }
  0x10   :  { %p500_p7 = pnand %p499_p6, %p493_p3 }
  0x12   :  { %503 = shalt.err (!%p500_p7)
}
  0x13   :  { %s531_s20 = smov 128   ;;  %s532_s21 = smov 8  }
  0x14   :  { %33 = dma.hbm_to_vmem [thread:$0]  %s659_s2, 384, %s28_s12, [#allocation4], %s531_s20, %s531_s20, %s532_s21  }
  0x15   :  { %s533_s24 = smov [#allocation5]   ;;  %s504_s28 = scalar_lea.hbm %s660_s3, 128 }
  0x16   :  { %s40_s25 = sshll.u32 %s533_s24, 4  ;;  %p505_p8 = scmp.ne.s32.totalorder %s660_s3, %s504_s28  ;;  %s41_s25 = int_to_ptr.vmem [resolvable:$true] %s40_s25 }
  0x17   :  { %p508_p9 = scmp.lt.u32.totalorder %s504_s28, %s660_s3 }
  0x19   :  { %p510_p10 = pnand %p508_p9, %p505_p8 }
  0x1b   :  { %513 = shalt.err (!%p510_p10)
}
  0x1c   :  { %s514_s13 = scalar_lea.vmem %s41_s25, 128  ;;  %p519_p12 = scmp.lt.s32.totalorder %s41_s25, %s41_s25 }
  0x1d   :  { %p515_p11 = scmp.ne.s32.totalorder %s41_s25, %s514_s13  ;;  %p520_p13 = scmp.lt.s32.totalorder %s514_s13, %s514_s13 }
  0x1f   :  { %p521_p0 = por %p520_p13, %p519_p12 }
  0x21   :  { %p522_p1 = pnand %p521_p0, %p515_p11 }
  0x23   :  { %525 = shalt.err (!%p522_p1)
}
  0x24   :  { %43 = dma.hbm_to_vmem [thread:$0]  %s660_s3, 128, %s41_s25, [#allocation6]  }
  0x25   :  { %526 = dma.done.wait [#allocation4], 384  }
  0x26   :  { %527 = vsyncadd [#allocation4], 4294966912 }
  0x27   :  { %528 = dma.done.wait [#allocation6], 128  }
  0x28   :  { %529 = vsyncadd [#allocation6], 4294967168  ;;  %v534_v1 = vmov 0.0|0.0   ;;  %v535_v2 = vmov 0.0   ;;  %vm536_vm0 = vmmov 0   ;;  %vm66_vm1 = vcmask 64512  }
  0x29   :  { %460 = vmatprep.subr.bf16.mxu1 %v534_v1  ;;  %424 = vmatprep.subr.mxu0 %v535_v2  ;;  %v61_v3 = vld [vmem:[#allocation3] sm:$0xff]  ;;  %v62_v4 = vld [vmem:[#allocation3 + $0x8] sm:$0xff]  ;;  %v65_v5 = vld [vmem:[#allocation5] sm:$0xff]  ;;  %vm140_vm2 = vcmask 195584   ;;  %vm234_vm3 = vcmask 261120   ;;  %vm393_vm4 = vcmask 7168  }
  0x2a   :  { %426 = vmatprep.mubr.msk.f32.mxu0 %vm536_vm0, %v535_v2  ;;  %435 = vmatprep.mubr.msk.f32.mxu1 %vm536_vm0, %v535_v2  ;;  %v461_v6 = vpack.c.bf16 %v62_v4, %v61_v3  ;;  %v64_v7 = vld [vmem:[%s658_s1] sm:$0xff]  ;;  %v63_v8 = vld [vmem:[#allocation3 + $0x10] sm:$0xff]  ;;  %v224_v11 = vld [vmem:[%s662_s5 + $0x8] sm:$0xff] }
  0x2b   :  { %425 = vmatpush3.msra.mxu0 %v65_v5  ;;  %v60_v9 = vld [vmem:[%s657_s0] sm:$0xff]  ;;  %v225_v13 = vld [vmem:[%s662_s5 + $0x10] sm:$0xff]  ;;  %v226_v14 = vld [vmem:[%s662_s5 + $0x18] sm:$0xff] }
  0x2c   :  { %427 = vmatmul.mubr.msk.f32.vlgmr.msra.gmra.mrb[0].mxu0 %vm66_vm1, %v64_v7  ;;  %463 = vmatprep.subr.bf16.mxu0 %v534_v1  ;;  %v223_v10 = vld [vmem:[%s662_s5] sm:$0xff]  ;;  %v467_v15 = vpack.c.bf16 %v226_v14, %v225_v13  ;;  %v310_v17 = vld [vmem:[%s664_s7 + $0x8] sm:$0xff]  ;;  %v311_v27 = vld [vmem:[%s664_s7 + $0x10] sm:$0xff] }
  0x2d   :  { %462 = vmatpush3.bf16.msra.mxu1 %v461_v6  ;;  %446 = vmatprep.mubr.msk.f32.mxu0 %vm536_vm0, %v535_v2  ;;  %v464_v12 = vpack.c.bf16 %v224_v11, %v223_v10  ;;  %v309_v16 = vld [vmem:[%s664_s7] sm:$0xff]  ;;  %v312_v28 = vld [vmem:[%s664_s7 + $0x18] sm:$0xff] }
  0x2e   :  { %433 = vmatprep.subr.mxu1 %v535_v2  ;;  %v470_v18 = vpack.c.bf16 %v310_v17, %v309_v16  ;;  %v403_v22 = vld [vmem:[%s661_s4] ss:$0 sm:$0xff]  ;;  %v473_v29 = vpack.c.bf16 %v312_v28, %v311_v27 }
  0x2f   :  { %465 = vmatpush3.bf16.msra.mxu0 %v464_v12  ;;  %v404_v30 = vld [vmem:[%s663_s6] ss:$0 sm:$0xff] }
  0x30   :  { %466 = vmatprep.subr.bf16.mxu0 %v534_v1  ;;  %v406_v35 = vld [vmem:[#allocation2] ss:$0 sm:$0xff] }
  0x31   :  { %434 = vmatpush3.msra.mxu1 %v63_v8 }
  0x32   :  { %436 = vmatmul.mubr.msk.f32.vlgmr.msra.gmra.mrb[0].mxu1 %vm140_vm2, %v60_v9  ;;  %469 = vmatprep.subr.bf16.mxu1 %v534_v1 }
  0x33   :  { %457 = vmatprep.mubr.msk.f32.mxu1 %vm536_vm0, %v535_v2  ;;  %468 = vmatpush3.bf16.msra.mxu0 %v467_v15 }
  0x34   :  { %471 = vmatpush3.bf16.msra.mxu1 %v470_v18 }
  0x35   :  { %472 = vmatprep.subr.bf16.mxu1 %v534_v1 }
  0x38   :  { %474 = vmatpush3.bf16.msra.mxu1 %v473_v29 }
  0xff   :  { %v136_v19 = vpop.f32.mrb[0].mxu0 }
 0x100   :  { %v428_v20 = vpop.f32.mrb[1].mxu0 }
 0x105   :  { %v210_v21 = vpop.f32.mrb[0].mxu1 }
 0x106   :  { %v211_v23 = vadd.f32 %v210_v21, %v136_v19  ;;  %v437_v24 = vpop.f32.mrb[1].mxu1 }
 0x108   :  { %v221_v25 = vadd.f32 %v403_v22, %v211_v23 }
 0x10a   :  { %v222_v26 = vmax.f32 %v221_v25, 0.0 }
 0x10c   :  { %447 = vmatmul.mubr.msk.f32.vlgmr.msra.gmra.mrb[2].mxu0 %vm234_vm3, %v222_v26 }
 0x1df   :  { %v304_v31 = vpop.f32.mrb[2].mxu0 }
 0x1e0   :  { %v305_v32 = vadd.f32 %v404_v30, %v304_v31  ;;  %v448_v33 = vpop.f32.mrb[3].mxu0 }
 0x1e2   :  { %v308_v34 = vmax.f32 %v305_v32, 0.0 }
 0x1e4   :  { %458 = vmatmul.mubr.msk.f32.vlgmr.msra.gmra.mrb[2].mxu1 %vm234_vm3, %v308_v34 }
 0x2b7   :  { %v389_v36 = vpop.f32.mrb[2].mxu1 }
 0x2b8   :  { %v390_v37 = vadd.f32 %v406_v35, %v389_v36  ;;  %v459_v38 = vpop.f32.mrb[3].mxu1 }
 0x2ba   :  { %394 = vst.msk [vmem:[%s666_s9] sm:$0xff] %vm393_vm4, %v390_v37 }
 0x2bb   :  { %399 = vsyncpa [#allocation4], 1 }
 0x2bc   :  { %400 = vsyncpa [#allocation6], 1 }

</bundles_post_ra>
